<compile_context>
chip_gen: v7x
topology: tpu7x:2x2x1
jax: 0.10.0
libtpu: 0.0.40
codegen_flags: <defaults>
</compile_context>

<pallas_src>
import functools

import numpy as np
import jax
import jax.numpy as jnp
from jax.experimental import pallas as pl
from jax.experimental.pallas import tpu as pltpu


_TWO_PI = np.float32(2.0 * np.pi)   # == 2 * f32(pi) exactly (power-of-2 scaling)


def _fourier_kernel_slab(x_ref, w_ref, out_ref, *, half):
    # x_ref: (tb, 1), w_ref: (1, half), out_ref: (tb, 2*half).  half % 128 == 0, so
    # both slab stores below are lane-aligned and unmasked.
    arg = (x_ref[...] * w_ref[...]) * _TWO_PI                    # (tb, half), VPU
    out_ref[:, :half] = jnp.sin(arg).astype(out_ref.dtype)       # aligned slab store
    out_ref[:, half:] = jnp.cos(arg).astype(out_ref.dtype)       # aligned slab store


def _fourier_kernel_select(x_ref, w2_ref, out_ref, *, half):
    # x_ref: (tb, 1), w2_ref: (1, 2*half) = [W | W], out_ref: (tb, 2*half); half < 128.
    # Compute the full-width argument once, pick sin for lanes < half and cos for the
    # rest, and do ONE full-width lane-dense store (no lane-offset realign).
    arg = (x_ref[...] * w2_ref[...]) * _TWO_PI                   # (tb, 2*half)
    lane = jax.lax.broadcasted_iota(jnp.int32, arg.shape, dimension=1)
    out = jnp.where(lane < half, jnp.sin(arg), jnp.cos(arg))
    out_ref[...] = out.astype(out_ref.dtype)


def _pick_batch_tile(batch, embed_dim, *, max_rows=1024, vmem_budget_bytes=12 << 20):
    """Rows per batch tile.

    Keeps ~8 f32 tile-sized buffers under the VMEM budget (safe on v5e's 16 MiB
    scoped default), and for larger batches picks an even number of roughly equal
    grid steps so the "parallel" batch axis gives both v7x TensorCores balanced work.
    """
    cap = max(8, (vmem_budget_bytes // (embed_dim * 4 * 8)) // 8 * 8)
    max_rows = min(max_rows, cap)
    if batch <= 64 and batch <= max_rows:
        return batch                            # single full-batch tile
    n_steps = max(2, pl.cdiv(batch, max_rows))
    n_steps += n_steps % 2                      # even step count (2-TC balance on v7x)
    tb = 8 * pl.cdiv(pl.cdiv(batch, n_steps), 8)
    return max(8, min(tb, max_rows))


def gaussian_fourier_projection(x, W, *, out_dtype=jnp.float32):
    """x: (B,) float timesteps; W: (embed_dim//2,) fixed Gaussian weights.

    Returns (B, embed_dim) = concat([sin(x*W*2pi), cos(x*W*2pi)], axis=-1),
    matching the PyTorch forward.
    """
    B = x.shape[0]
    half = W.shape[0]
    embed_dim = 2 * half

    x2d = x.reshape(B, 1).astype(jnp.float32)
    w32 = W.astype(jnp.float32)

    tb = _pick_batch_tile(B, embed_dim)
    grid = (pl.cdiv(B, tb),)

    use_select = half < 128                     # sub-lane-tile half: single-store path
    if use_select:
        # [W | W] so the kernel emits one lane-dense store. Pure layout plumbing —
        # W is a fixed, non-trainable parameter; in a real model this is done once
        # at parameter-init time.
        w_arg = jnp.concatenate([w32, w32]).reshape(1, embed_dim)
        kernel = functools.partial(_fourier_kernel_select, half=half)
        w_spec = pl.BlockSpec((1, embed_dim), lambda i: (0, 0))
    else:
        w_arg = w32.reshape(1, half)
        kernel = functools.partial(_fourier_kernel_slab, half=half)
        w_spec = pl.BlockSpec((1, half), lambda i: (0, 0))

    cost = pl.CostEstimate(
        flops=2 * B * embed_dim,                                    # the two vmuls
        transcendentals=(2 if use_select else 1) * B * embed_dim,   # sin + cos
        bytes_accessed=4 * (B + w_arg.size)
        + B * embed_dim * jnp.dtype(out_dtype).itemsize,
    )

    return pl.pallas_call(
        kernel,
        out_shape=jax.ShapeDtypeStruct((B, embed_dim), out_dtype),
        grid=grid,
        in_specs=[
            pl.BlockSpec((tb, 1), lambda i: (i, 0)),   # batch tile of timesteps
            w_spec,                                    # W resident across the grid
        ],
        out_specs=pl.BlockSpec((tb, embed_dim), lambda i: (i, 0)),
        compiler_params=pltpu.CompilerParams(
            dimension_semantics=("parallel",),         # shard row tiles across TCs (v7x)
        ),
        cost_estimate=cost,
    )(x2d, w_arg)


if __name__ == "__main__":
    key = jax.random.PRNGKey(0)
    k_w, k_x = jax.random.split(key)

    embed_dim = 64
    scale = 30.0
    batch = 8

    # Deterministic parameter init: W = randn(embed_dim // 2) * scale (non-trainable).
    W = jax.random.normal(k_w, (embed_dim // 2,), dtype=jnp.float32) * scale
    # Example timesteps in [0, 1), like diffusion time inputs.
    x = jax.random.uniform(k_x, (batch,), dtype=jnp.float32)

    out = gaussian_fourier_projection(x, W)
    out = jax.block_until_ready(out)

    # Reference check against plain JAX (mirrors the PyTorch forward ordering).
    # The kernel's argument (x*W)*f32(2*pi) is bitwise identical to the reference
    # ((x*W)*2)*f32(pi) (exact power-of-2 scaling), so residual differences are only
    # from sin/cos expansion differences between the Mosaic and XLA lowerings.
    x_proj_ref = x[:, None] * W[None, :] * 2 * np.pi
    ref = jnp.concatenate([jnp.sin(x_proj_ref), jnp.cos(x_proj_ref)], axis=-1)
    assert out.shape == (batch, embed_dim)
    np.testing.assert_allclose(np.asarray(out), np.asarray(ref), rtol=1e-4, atol=1e-4)

    print("KERNEL_OK")
</pallas_src>

<mosaic_0001>
module attributes {stable_mosaic.version = 11 : i64} {
  func.func @_fourier_kernel_select(%arg0: i32, %arg1: memref<8x1xf32, #tpu.memory_space<vmem>>, %arg2: memref<1x64xf32, #tpu.memory_space<vmem>>, %arg3: memref<8x64xf32, #tpu.memory_space<vmem>>) attributes {dimension_semantics = [#tpu.dimension_semantics<parallel>], iteration_bounds = array<i64: 1>, scalar_prefetch = 0 : i64, scratch_operands = 0 : i64, tpu.core_type = #tpu.core_type<tc>, window_params = [{transform_indices = @transform_0, window_bounds = array<i64: 8, 1>}, {pipeline_mode = #tpu.pipeline_mode<synchronous>, transform_indices = @transform_1, window_bounds = array<i64: 1, 64>}, {transform_indices = @transform_2, window_bounds = array<i64: 8, 64>}]} {
    %c0 = arith.constant 0 : index
    %c0_0 = arith.constant 0 : index
    %0 = vector.load %arg1[%c0, %c0_0] : memref<8x1xf32, #tpu.memory_space<vmem>>, vector<8x1xf32>
    %c0_1 = arith.constant 0 : index
    %c0_2 = arith.constant 0 : index
    %1 = vector.load %arg2[%c0_1, %c0_2] : memref<1x64xf32, #tpu.memory_space<vmem>>, vector<1x64xf32>
    %2 = vector.broadcast %0 : vector<8x1xf32> to vector<8x64xf32>
    %3 = vector.broadcast %1 : vector<1x64xf32> to vector<8x64xf32>
    %4 = arith.mulf %2, %3 : vector<8x64xf32>
    %cst = arith.constant 6.28318548 : f32
    %5 = vector.broadcast %cst : f32 to vector<8x64xf32>
    %6 = arith.mulf %4, %5 : vector<8x64xf32>
    %7 = tpu.iota {dimensions = array<i32: 1>} : vector<8x64xi32>
    %c32_i32 = arith.constant 32 : i32
    %8 = vector.broadcast %c32_i32 : i32 to vector<8x64xi32>
    %9 = arith.cmpi slt, %7, %8 : vector<8x64xi32>
    %10 = math.sin %6 : vector<8x64xf32>
    %11 = math.cos %6 : vector<8x64xf32>
    %12 = arith.select %9, %10, %11 : vector<8x64xi1>, vector<8x64xf32>
    %c0_3 = arith.constant 0 : index
    %c0_4 = arith.constant 0 : index
    %13 = vector.load %arg3[%c0_3, %c0_4] : memref<8x64xf32, #tpu.memory_space<vmem>>, vector<8x64xf32>
    tpu.vector_store %arg3[%c0_3, %c0_4], %12 {strides = array<i32>} : memref<8x64xf32, #tpu.memory_space<vmem>>, vector<8x64xf32>,
    return
  }
  func.func @transform_0(%arg0: i32) -> (i32, i32) {
    %c0_i32 = arith.constant 0 : i32
    %c0_i32_0 = arith.constant 0 : i32
    return %arg0, %c0_i32 : i32, i32
  }
  func.func @transform_1(%arg0: i32) -> (i32, i32) {
    %c0_i32 = arith.constant 0 : i32
    %c0_i32_0 = arith.constant 0 : i32
    %c0_i32_1 = arith.constant 0 : i32
    return %c0_i32, %c0_i32_0 : i32, i32
  }
  func.func @transform_2(%arg0: i32) -> (i32, i32) {
    %c0_i32 = arith.constant 0 : i32
    %c0_i32_0 = arith.constant 0 : i32
    return %arg0, %c0_i32 : i32, i32
  }
}

</mosaic_0001>

<bundles_post_ra>
// kernel: tpu_custom_call.1
= control target key start
LH: loop header
LB: loop body
LE: loop exit
PB: predicated region body
PF: predicated region fallthrough
CT: control target
= control target key end

     0   :  { %v304_v1 = vmov 0   ;;  %s367_s0 = inlined_call_operand.vmem [shape: f32[8,1], index: 0, kind: input, shape index: {}]   ;;  %s368_s1 = inlined_call_operand.vmem [shape: f32[1,64], index: 1, kind: input, shape index: {}]   ;;  %s369_s2 = inlined_call_operand.hbm [shape: f32[8,64], index: 2, kind: output, shape index: {}]  }
   0x1   :  { %v12_v0 = vld [vmem:[%s367_s0] sm:$0xff]  ;;  %275 = vset.pattern.permute.xlu0 %v304_v1 }
   0x2   :  { %16 = vperm.xlu0 %275, %v12_v0  }
   0x3   :  { %7 = vsyncpa [#allocation3], 0  ;;  %v254_v2 = vld [vmem:[%s368_s1] ss:$0 sm:$0xff]  ;;  %v305_v16 = vmov 683565275  }
   0x4   :  { %v306_v18 = vmov 2475754826   ;;  %v307_v21 = vmov 2131351028   ;;  %v308_v24 = vmov 2102212464  }
   0x5   :  { %v309_v27 = vmov 920167782   ;;  %v310_v30 = vmov 1326507024   ;;  %s311_s0 = smov [#allocation2]  }
   0x6   :  { %s246_s1 = sshll.u32 %s311_s0, 4  ;;  %s247_s1 = int_to_ptr.vmem [resolvable:$true] %s246_s1 }
   0x7   :  { %s280_s13 = scalar_lea.vmem %s247_s1, 128  ;;  %p285_p1 = scmp.lt.s32.totalorder %s247_s1, %s247_s1 }
   0x8   :  { %p281_p0 = scmp.ne.s32.totalorder %s247_s1, %s280_s13  ;;  %p286_p2 = scmp.lt.s32.totalorder %s280_s13, %s280_s13 }
   0xa   :  { %p287_p3 = por %p286_p2, %p285_p1 }
   0xc   :  { %p288_p4 = pnand %p287_p3, %p281_p0 }
  0x81   :  { %v17_v3 = vpop.permute.xlu0 %16 }
  0x82   :  { %v25_v4 = vmul.f32 %v254_v2, %v17_v3 }
  0x84   :  { %v333_v5 = vmul.f32 6.2831855, %v25_v4 }
  0x86   :  { %v33_v6 = vand.u32 2139095040, %v333_v5  ;;  %v30_v10 = vand.u32 2147483647, %v333_v5  ;;  %vm32_vm7 = vcmp.lt.s32.totalorder %v333_v5, 0 }
  0x88   :  { %v34_v7 = vshrl.u32 %v33_v6, 23  ;;  %v37_v13 = vand.u32 8388607, %v30_v10  ;;  %vm31_vm8 = vcmp.le.f32.partialorder %v30_v10, 0.7853982 }
  0x8a   :  { %v255_v8 = vadd.s32 4294967169, %v34_v7  ;;  %v38_v32 = vor.u32 8388608, %v37_v13 }
  0x8c   :  { %v40_v9 = vadd.s32 1, %v255_v8  ;;  %v78_v46 = vshll.u32 %v38_v32, 8 }
  0x8e   :  { %vm41_vm0 = vcmp.gt.s32.totalorder %v40_v9, 0 }
  0x8f   :  { %v42_v11 = vsel %vm41_vm0, %v40_v9, 0  ;;  %vm122_vm0 = vweird.f32 %v333_v5 }
  0x90   :  { %v44_v12 = vand.u32 31, %v42_v11  ;;  %v43_v15 = vshrl.u32 %v42_v11, 5 }
  0x92   :  { %v45_v14 = vsub.s32 32, %v44_v12  ;;  %v47_v17 = vshll.u32 %v305_v16, %v44_v12  ;;  %v50_v19 = vshll.u32 %v306_v18, %v44_v12  ;;  %v53_v23 = vshll.u32 %v307_v21, %v44_v12 }
  0x93   :  { %v56_v26 = vshll.u32 %v308_v24, %v44_v12  ;;  %v59_v29 = vshll.u32 %v309_v27, %v44_v12  ;;  %vm62_vm1 = vcmp.lt.s32.totalorder %v43_v15, 1  ;;  %vm65_vm2 = vcmp.lt.s32.totalorder %v43_v15, 4 }
  0x94   :  { %v48_v20 = vshrl.u32 %v306_v18, %v45_v14  ;;  %v51_v22 = vshrl.u32 %v307_v21, %v45_v14  ;;  %v54_v25 = vshrl.u32 %v308_v24, %v45_v14  ;;  %v57_v28 = vshrl.u32 %v309_v27, %v45_v14 }
  0x95   :  { %v60_v31 = vshrl.u32 %v310_v30, %v45_v14  ;;  %v46_v41 = vshrl.u32 %v305_v16, %v45_v14  ;;  %vm64_vm3 = vcmp.lt.s32.totalorder %v43_v15, 3  ;;  %vm63_vm4 = vcmp.lt.s32.totalorder %v43_v15, 2 }
  0x96   :  { %v49_v33 = vor.u32 %v48_v20, %v47_v17  ;;  %v52_v34 = vor.u32 %v51_v22, %v50_v19  ;;  %v55_v35 = vor.u32 %v54_v25, %v53_v23  ;;  %v58_v36 = vor.u32 %v57_v28, %v56_v26 }
  0x97   :  { %v61_v37 = vor.u32 %v60_v31, %v59_v29  ;;  %v27_v25 = vlaneseq }
  0x98   :  { %v67_v38 = vsel %vm65_vm2, %v55_v35, 2102212464  ;;  %v70_v39 = vsel %vm62_vm1, %v49_v33, %v52_v34  ;;  %v74_v40 = vsel %vm62_vm1, %v52_v34, %v55_v35  ;;  %v71_v42 = vsel %vm65_vm2, %v58_v36, 920167782 }
  0x99   :  { %v75_v43 = vsel %vm65_vm2, %v61_v37, 1326507024  ;;  %v72_v44 = vsel %vm64_vm3, %v55_v35, %v71_v42  ;;  %v66_v47 = vsel %vm62_vm1, %v46_v41, %v49_v33  ;;  %v68_v48 = vsel %vm64_vm3, %v52_v34, %v67_v38 }
  0x9a   :  { %v76_v45 = vsel %vm64_vm3, %v58_v36, %v75_v43  ;;  %v73_v49 = vsel %vm63_vm4, %v70_v39, %v72_v44  ;;  %v69_v55 = vsel %vm63_vm4, %v66_v47, %v68_v48  ;;  %v28_v27 = vand.u32 127, %v27_v25 }
  0x9b   :  { %v77_v50 = vsel %vm63_vm4, %v74_v40, %v76_v45  ;;  %v342_v53 = vmul.u32.u64.low %v78_v46, %v73_v49  ;;  %v343_v54 = vmul.u32.u64.high %v78_v46, %v73_v49, %v342_v53  ;;  %v85_v57 = vmul.u32 %v78_v46, %v69_v55 }
  0x9c   :  { %v339_v51 = vmul.u32.u64.low %v78_v46, %v77_v50  ;;  %v340_v52 = vmul.u32.u64.high %v78_v46, %v77_v50, %v339_v51  ;;  %vm29_vm9 = vcmp.lt.s32.totalorder %v28_v27, 32  ;;  %vm238_vm1 = vcmask 523264  }
  0x9d   :  { %v88_v56 = vadd.s32 1, %v343_v54 }
  0x9e   :  { %vm87_vm5 = vc.u32 %v340_v52, %v342_v53  ;;  %v86_v6 = vadd.s32 %v342_v53, %v340_v52 }
  0x9f   :  { %v89_v58 = vsel %vm87_vm5, %v88_v56, %v343_v54 }
  0xa0   :  { %v90_v59 = vadd.s32 %v89_v58, %v85_v57 }
  0xa2   :  { %v91_v60 = vadd.s32 536870912, %v90_v59 }
  0xa4   :  { %v92_v61 = vshrl.u32 %v91_v60, 30 }
  0xa6   :  { %v93_v62 = vshll.u32 %v92_v61, 30  ;;  %v116_v19 = vsub.s32 4, %v92_v61 }
  0xa8   :  { %v94_v63 = vsub.s32 %v90_v59, %v93_v62  ;;  %v117_v22 = vsel %vm32_vm7, %v116_v19, %v92_v61 }
  0xa9   :  { %v119_v24 = vsel %vm31_vm8, 0, %v117_v22 }
  0xaa   :  { %v96_v0 = vsub.s32 0, %v94_v63  ;;  %v123_v26 = vadd.s32 3, %v119_v24  ;;  %v227_v29 = vand.u32 3, %v119_v24 }
  0xac   :  { %v256_v1 = vmin.u32 %v96_v0, %v94_v63  ;;  %v124_v28 = vand.u32 3, %v123_v26  ;;  %vm232_vm11 = vcmp.eq.s32.totalorder %v227_v29, 2  ;;  %vm229_vm13 = vcmp.eq.s32.totalorder %v227_v29, 0 }
  0xad   :  { %vm228_vm15 = vcmp.lt.s32.totalorder %v227_v29, 2 }
  0xae   :  { %v98_v2 = vclz %v256_v1  ;;  %vm129_vm10 = vcmp.eq.s32.totalorder %v124_v28, 2  ;;  %vm126_vm12 = vcmp.eq.s32.totalorder %v124_v28, 0  ;;  %vm125_vm14 = vcmp.lt.s32.totalorder %v124_v28, 2 }
  0xb0   :  { %v257_v3 = vadd.s32 4294967294, %v98_v2 }
  0xb2   :  { %vm258_vm6 = vcmp.lt.s32.totalorder %v257_v3, 0 }
  0xb3   :  { %v101_v4 = vsel %vm258_vm6, 0, %v257_v3 }
  0xb4   :  { %v102_v7 = vsub.s32 32, %v101_v4  ;;  %v106_v8 = vsub.s32 4294967266, %v101_v4  ;;  %v103_v9 = vshll.u32 %v94_v63, %v101_v4 }
  0xb6   :  { %v104_v11 = vshrl.u32 %v86_v6, %v102_v7  ;;  %v107_v12 = vadd.s32 127, %v106_v8 }
  0xb8   :  { %v105_v13 = vor.u32 %v104_v11, %v103_v9  ;;  %v108_v14 = vshll.u32 %v107_v12, 23 }
  0xba   :  { %v109_v15 = vor.u32 4788187, %v108_v14  ;;  %v112_v17 = vcvt.s32.f32 %v105_v13 }
  0xbc   :  { %v110_v16 = vand.u32 2147483647, %v109_v15 }
  0xbe   :  { %v113_v18 = vmul.f32 %v112_v17, %v110_v16 }
  0xc0   :  { %v114_v20 = vxor.u32 2147483648, %v113_v18 }
  0xc2   :  { %v115_v21 = vsel %vm32_vm7, %v114_v20, %v113_v18 }
  0xc3   :  { %v118_v23 = vsel %vm31_vm8, %v333_v5, %v115_v21 }
  0xc4   :  { %276 = vcosq.f32 %v118_v23 }
  0xc5   :  { %278 = vsinq.f32 %v118_v23 }
  0xce   :  { %v277_v30 = vpop.eup %276 }
  0xcf   :  { %v279_v31 = vpop.eup %278  ;;  %v130_v32 = vxor.u32 2147483648, %v277_v30 }
  0xd0   :  { %v127_v33 = vxor.u32 2147483648, %v279_v31 }
  0xd1   :  { %v131_v10 = vsel %vm129_vm10, %v130_v32, %v279_v31  ;;  %v234_v34 = vsel %vm232_vm11, %v130_v32, %v279_v31 }
  0xd2   :  { %v128_v35 = vsel %vm126_vm12, %v277_v30, %v127_v33  ;;  %v231_v36 = vsel %vm229_vm13, %v277_v30, %v127_v33 }
  0xd3   :  { %v132_v37 = vsel %vm125_vm14, %v128_v35, %v131_v10  ;;  %v235_v38 = vsel %vm228_vm15, %v231_v36, %v234_v34 }
  0xd4   :  { %v133_v39 = vsel %vm122_vm0, nan, %v132_v37  ;;  %v236_v40 = vsel %vm122_vm0, nan, %v235_v38 }
  0xd5   :  { %v237_v41 = vsel %vm29_vm9, %v133_v39, %v236_v40 }
  0xd6   :  { %239 = vst.msk [vmem:[#allocation2] sm:$0xff] %vm238_vm1, %v237_v41 }
  0xd7   :  { %291 = shalt.err (!%p288_p4)
}
  0xd8   :  { %s292_s16 = scalar_lea.hbm %s369_s2, 128 }
  0xd9   :  { %p293_p5 = scmp.ne.s32.totalorder %s369_s2, %s292_s16  ;;  %p296_p6 = scmp.lt.u32.totalorder %s292_s16, %s369_s2 }
  0xdb   :  { %p298_p7 = pnand %p296_p6, %p293_p5 }
  0xdd   :  { %301 = shalt.err (!%p298_p7)
}
  0xde   :  { %249 = dma.vmem_to_hbm [thread:$0]  %s247_s1, 128, %s369_s2, [#allocation3]  }
  0xdf   :  { %302 = dma.done.wait [#allocation3], 128  }
  0xe0   :  { %303 = vsyncadd [#allocation3], 4294967168 }
  0xe1   :  { %253 = vsyncpa [#allocation3], 1 }

</bundles_post_ra>
